<compile_context>
chip_gen: v7x
topology: tpu7x:2x2x1
jax: 0.10.0
libtpu: 0.0.40
codegen_flags: <defaults>
</compile_context>

<pallas_src>
import jax
import jax.numpy as jnp
from jax.experimental import pallas as pl
from jax.experimental.pallas import tpu as pltpu


def _round_up(n, m):
    return pl.cdiv(n, m) * m


def _classifier_kernel(x_ref, w1_ref, b1_ref, w2_ref, b2_ref, o_ref):
    # hidden = relu(x @ W1 + b1)  -- MXU matmul with f32 accumulation,
    # bias add + ReLU in f32 on the VPU (b1 is (1, MID), broadcast over batch).
    h = jnp.dot(x_ref[...], w1_ref[...], preferred_element_type=jnp.float32)
    h = jnp.maximum(h + b1_ref[...], 0.0)
    # out = hidden @ W2 + b2  (cast h to the weight compute dtype for the MXU).
    out = jnp.dot(h.astype(w2_ref.dtype), w2_ref[...],
                  preferred_element_type=jnp.float32)
    o_ref[...] = (out + b2_ref[...]).astype(o_ref.dtype)


def classifier_forward(x, w1, b1, w2, b2, *, compute_dtype=None, tb_max=256):
    """x: (B, size_in); w1: (size_in, size_mid); w2: (size_mid, size_out).

    Returns (B, size_out) in x.dtype. compute_dtype (e.g. jnp.bfloat16) applies
    to x/w1/w2 only; accumulation, bias add and ReLU stay in f32.
    """
    B, size_in = x.shape
    size_mid = w1.shape[1]
    size_out = w2.shape[1]
    assert w1.shape == (size_in, size_mid)
    assert w2.shape == (size_mid, size_out)
    out_dtype = x.dtype
    cdt = compute_dtype if compute_dtype is not None else x.dtype

    # (8,128)-aligned padded feature dims -> unmasked vregs / lane-dense stores.
    in_p = _round_up(size_in, 128)
    mid_p = _round_up(size_mid, 128)
    out_p = _round_up(size_out, 128)

    # Batch tile: 256 rows (fills the 256-wide MXU M dim on v6e/v7x, two passes
    # of the 128-wide v5e MXU) but never larger than the (8-aligned) batch.
    tb = min(tb_max, _round_up(B, 8))
    b_pad = _round_up(B, tb)
    grid = (b_pad // tb,)

    # Zero-pad once in the wrapper (for a real model, pad the weights at init).
    x_p = jnp.zeros((b_pad, in_p), cdt).at[:B, :size_in].set(x.astype(cdt))
    w1_p = jnp.zeros((in_p, mid_p), cdt).at[:size_in, :size_mid].set(w1.astype(cdt))
    w2_p = jnp.zeros((mid_p, out_p), cdt).at[:size_mid, :size_out].set(w2.astype(cdt))
    b1_p = jnp.zeros((1, mid_p), jnp.float32).at[0, :size_mid].set(b1.astype(jnp.float32))
    b2_p = jnp.zeros((1, out_p), jnp.float32).at[0, :size_out].set(b2.astype(jnp.float32))

    itemsize = jnp.dtype(cdt).itemsize
    cost = pl.CostEstimate(
        flops=2 * b_pad * (in_p * mid_p + mid_p * out_p),
        transcendentals=0,
        bytes_accessed=(b_pad * in_p * itemsize            # x
                        + in_p * mid_p * itemsize          # w1
                        + mid_p * out_p * itemsize         # w2
                        + (mid_p + out_p) * 4              # biases
                        + b_pad * out_p * jnp.dtype(out_dtype).itemsize),  # out
    )

    out = pl.pallas_call(
        _classifier_kernel,
        out_shape=jax.ShapeDtypeStruct((b_pad, out_p), out_dtype),
        grid=grid,
        in_specs=[
            pl.BlockSpec((tb, in_p), lambda i: (i, 0)),       # x tile per step
            pl.BlockSpec((in_p, mid_p), lambda i: (0, 0)),    # weights stay
            pl.BlockSpec((1, mid_p), lambda i: (0, 0)),       # VMEM-resident
            pl.BlockSpec((mid_p, out_p), lambda i: (0, 0)),   # across the grid
            pl.BlockSpec((1, out_p), lambda i: (0, 0)),
        ],
        out_specs=pl.BlockSpec((tb, out_p), lambda i: (i, 0)),
        compiler_params=pltpu.CompilerParams(
            dimension_semantics=("parallel",)),
        cost_estimate=cost,
    )(x_p, w1_p, b1_p, w2_p, b2_p)

    return out[:B, :size_out]


def init_classifier_params(key, size_in=500, size_mid=120, size_out=10,
                           dtype=jnp.float32):
    """Deterministic init mirroring nn.Linear default (U(-1/sqrt(fan_in), +))."""
    k1, k2, k3, k4 = jax.random.split(key, 4)
    bound1 = 1.0 / jnp.sqrt(size_in)
    bound2 = 1.0 / jnp.sqrt(size_mid)
    w1 = jax.random.uniform(k1, (size_in, size_mid), dtype, -bound1, bound1)
    b1 = jax.random.uniform(k2, (size_mid,), dtype, -bound1, bound1)
    w2 = jax.random.uniform(k3, (size_mid, size_out), dtype, -bound2, bound2)
    b2 = jax.random.uniform(k4, (size_out,), dtype, -bound2, bound2)
    return w1, b1, w2, b2


if __name__ == "__main__":
    key = jax.random.PRNGKey(0)
    kx, kp = jax.random.split(key)

    SIZE_IN, SIZE_MID, SIZE_OUT = 500, 120, 10
    w1, b1, w2, b2 = init_classifier_params(kp, SIZE_IN, SIZE_MID, SIZE_OUT)

    def ref_fn(x):
        return jnp.maximum(x @ w1 + b1, 0.0) @ w2 + b2

    # Small batch (single grid step, tb = 8).
    x_small = jax.random.normal(kx, (8, SIZE_IN), dtype=jnp.float32)
    out_small = jax.block_until_ready(classifier_forward(x_small, w1, b1, w2, b2))
    assert out_small.shape == (8, SIZE_OUT)
    assert jnp.allclose(out_small, ref_fn(x_small), atol=1e-4, rtol=1e-4)

    # Larger batch that is not a multiple of the tile: exercises the batch grid
    # (B=384 -> padded to 512, grid=(2,)) with VMEM-resident weights.
    x_big = jax.random.normal(kx, (384, SIZE_IN), dtype=jnp.float32)
    out_big = jax.block_until_ready(classifier_forward(x_big, w1, b1, w2, b2))
    assert out_big.shape == (384, SIZE_OUT)
    assert jnp.allclose(out_big, ref_fn(x_big), atol=1e-4, rtol=1e-4)

    # bf16 compute path (v6e/v7x MXU-native); looser tolerance vs the f32 ref.
    out_bf16 = jax.block_until_ready(
        classifier_forward(x_big, w1, b1, w2, b2, compute_dtype=jnp.bfloat16))
    assert out_bf16.shape == (384, SIZE_OUT)
    assert jnp.allclose(out_bf16, ref_fn(x_big), atol=5e-2, rtol=5e-2)

    print("KERNEL_OK")
</pallas_src>

<mosaic_0001>
module attributes {stable_mosaic.version = 11 : i64} {
  func.func @_classifier_kernel(%arg0: i32, %arg1: memref<8x512xf32, #tpu.memory_space<vmem>>, %arg2: memref<512x128xf32, #tpu.memory_space<vmem>>, %arg3: memref<1x128xf32, #tpu.memory_space<vmem>>, %arg4: memref<128x128xf32, #tpu.memory_space<vmem>>, %arg5: memref<1x128xf32, #tpu.memory_space<vmem>>, %arg6: memref<8x128xf32, #tpu.memory_space<vmem>>) attributes {dimension_semantics = [#tpu.dimension_semantics<parallel>], iteration_bounds = array<i64: 1>, scalar_prefetch = 0 : i64, scratch_operands = 0 : i64, tpu.core_type = #tpu.core_type<tc>, window_params = [{transform_indices = @transform_0, window_bounds = array<i64: 8, 512>}, {pipeline_mode = #tpu.pipeline_mode<synchronous>, transform_indices = @transform_1, window_bounds = array<i64: 512, 128>}, {pipeline_mode = #tpu.pipeline_mode<synchronous>, transform_indices = @transform_2, window_bounds = array<i64: 1, 128>}, {pipeline_mode = #tpu.pipeline_mode<synchronous>, transform_indices = @transform_3, window_bounds = array<i64: 128, 128>}, {pipeline_mode = #tpu.pipeline_mode<synchronous>, transform_indices = @transform_4, window_bounds = array<i64: 1, 128>}, {transform_indices = @transform_5, window_bounds = array<i64: 8, 128>}]} {
    %c0 = arith.constant 0 : index
    %c0_0 = arith.constant 0 : index
    %0 = vector.load %arg1[%c0, %c0_0] : memref<8x512xf32, #tpu.memory_space<vmem>>, vector<8x512xf32>
    %c0_1 = arith.constant 0 : index
    %c0_2 = arith.constant 0 : index
    %1 = vector.load %arg2[%c0_1, %c0_2] : memref<512x128xf32, #tpu.memory_space<vmem>>, vector<512x128xf32>
    %cst = arith.constant dense<0.000000e+00> : vector<8x128xf32>
    %2 = tpu.matmul %0, %1, %cst {dimension_numbers = #tpu.dot_dimension_numbers<[1], [0], [0], [1], [0, 0, 1, 1], [], []>} : vector<8x512xf32>, vector<512x128xf32>, vector<8x128xf32> -> vector<8x128xf32>
    %c0_3 = arith.constant 0 : index
    %c0_4 = arith.constant 0 : index
    %3 = vector.load %arg3[%c0_3, %c0_4] : memref<1x128xf32, #tpu.memory_space<vmem>>, vector<1x128xf32>
    %4 = vector.broadcast %3 : vector<1x128xf32> to vector<8x128xf32>
    %5 = arith.addf %2, %4 : vector<8x128xf32>
    %cst_5 = arith.constant 0.000000e+00 : f32
    %6 = vector.broadcast %cst_5 : f32 to vector<8x128xf32>
    %7 = arith.maximumf %5, %6 : vector<8x128xf32>
    %c0_6 = arith.constant 0 : index
    %c0_7 = arith.constant 0 : index
    %8 = vector.load %arg4[%c0_6, %c0_7] : memref<128x128xf32, #tpu.memory_space<vmem>>, vector<128x128xf32>
    %cst_8 = arith.constant dense<0.000000e+00> : vector<8x128xf32>
    %9 = tpu.matmul %7, %8, %cst_8 {dimension_numbers = #tpu.dot_dimension_numbers<[1], [0], [0], [1], [0, 0, 1, 1], [], []>} : vector<8x128xf32>, vector<128x128xf32>, vector<8x128xf32> -> vector<8x128xf32>
    %c0_9 = arith.constant 0 : index
    %c0_10 = arith.constant 0 : index
    %10 = vector.load %arg5[%c0_9, %c0_10] : memref<1x128xf32, #tpu.memory_space<vmem>>, vector<1x128xf32>
    %11 = vector.broadcast %10 : vector<1x128xf32> to vector<8x128xf32>
    %12 = arith.addf %9, %11 : vector<8x128xf32>
    %c0_11 = arith.constant 0 : index
    %c0_12 = arith.constant 0 : index
    %13 = vector.load %arg6[%c0_11, %c0_12] : memref<8x128xf32, #tpu.memory_space<vmem>>, vector<8x128xf32>
    tpu.vector_store %arg6[%c0_11, %c0_12], %12 {strides = array<i32>} : memref<8x128xf32, #tpu.memory_space<vmem>>, vector<8x128xf32>,
    return
  }
  func.func @transform_0(%arg0: i32) -> (i32, i32) {
    %c0_i32 = arith.constant 0 : i32
    %c0_i32_0 = arith.constant 0 : i32
    return %arg0, %c0_i32 : i32, i32
  }
  func.func @transform_1(%arg0: i32) -> (i32, i32) {
    %c0_i32 = arith.constant 0 : i32
    %c0_i32_0 = arith.constant 0 : i32
    %c0_i32_1 = arith.constant 0 : i32
    return %c0_i32, %c0_i32_0 : i32, i32
  }
  func.func @transform_2(%arg0: i32) -> (i32, i32) {
    %c0_i32 = arith.constant 0 : i32
    %c0_i32_0 = arith.constant 0 : i32
    %c0_i32_1 = arith.constant 0 : i32
    return %c0_i32, %c0_i32_0 : i32, i32
  }
  func.func @transform_3(%arg0: i32) -> (i32, i32) {
    %c0_i32 = arith.constant 0 : i32
    %c0_i32_0 = arith.constant 0 : i32
    %c0_i32_1 = arith.constant 0 : i32
    return %c0_i32, %c0_i32_0 : i32, i32
  }
  func.func @transform_4(%arg0: i32) -> (i32, i32) {
    %c0_i32 = arith.constant 0 : i32
    %c0_i32_0 = arith.constant 0 : i32
    %c0_i32_1 = arith.constant 0 : i32
    return %c0_i32, %c0_i32_0 : i32, i32
  }
  func.func @transform_5(%arg0: i32) -> (i32, i32) {
    %c0_i32 = arith.constant 0 : i32
    %c0_i32_0 = arith.constant 0 : i32
    return %arg0, %c0_i32 : i32, i32
  }
}

</mosaic_0001>

<bundles_post_ra>
// kernel: tpu_custom_call.1
= control target key start
LH: loop header
LB: loop body
LE: loop exit
PB: predicated region body
PF: predicated region fallthrough
CT: control target
= control target key end

     0   :  { %10 = vsyncpa [#allocation3], 0  ;;  %s800_s0 = inlined_call_operand.hbm [shape: f32[8,512], index: 0, kind: input, shape index: {}]   ;;  %s801_s1 = inlined_call_operand.hbm [shape: f32[512,128], index: 1, kind: input, shape index: {}]   ;;  %s802_s2 = inlined_call_operand.vmem [shape: f32[1,128], index: 2, kind: input, shape index: {}]   ;;  %s803_s3 = inlined_call_operand.hbm [shape: f32[128,128], index: 3, kind: input, shape index: {}]   ;;  %s804_s4 = inlined_call_operand.vmem [shape: f32[1,128], index: 4, kind: input, shape index: {}]   ;;  %s805_s5 = inlined_call_operand.hbm [shape: f32[8,128], index: 5, kind: output, shape index: {}]  }
   0x1   :  { %11 = vsyncpa [#allocation6], 0 }
   0x2   :  { %12 = vsyncpa [#allocation4], 0  ;;  %s701_s18 = smov [#allocation5]   ;;  %s607_s22 = scalar_lea.hbm %s801_s1, 8192 }
   0x3   :  { %s28_s19 = sshll.u32 %s701_s18, 4  ;;  %p608_p0 = scmp.ne.s32.totalorder %s801_s1, %s607_s22  ;;  %s29_s19 = int_to_ptr.vmem [resolvable:$true] %s28_s19 }
   0x4   :  { %p611_p1 = scmp.lt.u32.totalorder %s607_s22, %s801_s1 }
   0x6   :  { %p613_p2 = pnand %p611_p1, %p608_p0 }
   0x8   :  { %616 = shalt.err (!%p613_p2)
}
   0x9   :  { %s617_s27 = scalar_lea.vmem %s29_s19, 8192  ;;  %p622_p4 = scmp.lt.s32.totalorder %s29_s19, %s29_s19 }
   0xa   :  { %p618_p3 = scmp.ne.s32.totalorder %s29_s19, %s617_s27  ;;  %p623_p5 = scmp.lt.s32.totalorder %s617_s27, %s617_s27 }
   0xc   :  { %p624_p6 = por %p623_p5, %p622_p4 }
   0xe   :  { %p625_p7 = pnand %p624_p6, %p618_p3 }
  0x10   :  { %628 = shalt.err (!%p625_p7)
}
  0x11   :  { %s702_s28 = smov 128   ;;  %s703_s29 = smov 8  }
  0x12   :  { %34 = dma.hbm_to_vmem [thread:$0]  %s801_s1, 8192, %s29_s19, [#allocation6], %s702_s28, %s702_s28, %s703_s29  }
  0x13   :  { %s704_s7 = smov [#allocation2]   ;;  %s705_s9 = smov [#allocation7]  }
  0x14   :  { %s19_s8 = sshll.u32 %s704_s7, 4  ;;  %s42_s10 = sshll.u32 %s705_s9, 4  ;;  %s20_s8 = int_to_ptr.vmem [resolvable:$true] %s19_s8  ;;  %s43_s10 = int_to_ptr.vmem [resolvable:$true] %s42_s10 }
  0x15   :  { %s629_s13 = scalar_lea.hbm %s800_s0, 512 }
  0x16   :  { %p630_p8 = scmp.ne.s32.totalorder %s800_s0, %s629_s13  ;;  %p633_p9 = scmp.lt.u32.totalorder %s629_s13, %s800_s0 }
  0x18   :  { %p635_p10 = pnand %p633_p9, %p630_p8 }
  0x1a   :  { %638 = shalt.err (!%p635_p10)
}
  0x1b   :  { %s639_s1 = scalar_lea.vmem %s20_s8, 512  ;;  %p644_p12 = scmp.lt.s32.totalorder %s20_s8, %s20_s8 }
  0x1c   :  { %p640_p11 = scmp.ne.s32.totalorder %s20_s8, %s639_s1  ;;  %p645_p13 = scmp.lt.s32.totalorder %s639_s1, %s639_s1 }
  0x1e   :  { %p646_p0 = por %p645_p13, %p644_p12 }
  0x20   :  { %p647_p1 = pnand %p646_p0, %p640_p11 }
  0x22   :  { %650 = shalt.err (!%p647_p1)
}
  0x23   :  { %22 = dma.hbm_to_vmem [thread:$0]  %s800_s0, 512, %s20_s8, [#allocation3]  }
  0x24   :  { %s651_s22 = scalar_lea.hbm %s803_s3, 2048 }
  0x25   :  { %p652_p2 = scmp.ne.s32.totalorder %s803_s3, %s651_s22  ;;  %p655_p3 = scmp.lt.u32.totalorder %s651_s22, %s803_s3 }
  0x27   :  { %p657_p4 = pnand %p655_p3, %p652_p2 }
  0x29   :  { %660 = shalt.err (!%p657_p4)
}
  0x2a   :  { %s661_s27 = scalar_lea.vmem %s43_s10, 2048  ;;  %p666_p6 = scmp.lt.s32.totalorder %s43_s10, %s43_s10 }
  0x2b   :  { %p662_p5 = scmp.ne.s32.totalorder %s43_s10, %s661_s27  ;;  %p667_p7 = scmp.lt.s32.totalorder %s661_s27, %s661_s27 }
  0x2d   :  { %p668_p8 = por %p667_p7, %p666_p6 }
  0x2f   :  { %p669_p9 = pnand %p668_p8, %p662_p5 }
  0x31   :  { %672 = shalt.err (!%p669_p9)
}
  0x32   :  { %48 = dma.hbm_to_vmem [thread:$0]  %s803_s3, 2048, %s43_s10, [#allocation6], %s702_s28, %s702_s28, %s703_s29  }
  0x33   :  { %695 = dma.done.wait [#allocation3], 512  }
  0x34   :  { %696 = vsyncadd [#allocation3], 4294966784 }
  0x35   :  { %697 = dma.done.wait [#allocation6], 10240  }
  0x36   :  { %698 = vsyncadd [#allocation6], 4294957056  ;;  %v80_v0 = vld [vmem:[#allocation5 + $0x80] sm:$0xff]  ;;  %v81_v1 = vld [vmem:[#allocation5 + $0x88] sm:$0xff]  ;;  %vm707_vm0 = vmmov 0   ;;  %s709_s7 = smov [#allocation8]  }
  0x37   :  { %v64_v2 = vld [vmem:[#allocation5] sm:$0xff]  ;;  %v510_v3 = vpack.c.bf16 %v81_v1, %v80_v0  ;;  %v65_v4 = vld [vmem:[#allocation5 + $0x8] sm:$0xff]  ;;  %v82_v11 = vld [vmem:[#allocation5 + $0x90] sm:$0xff]  ;;  %s376_s8 = sshll.u32 %s709_s7, 4  ;;  %s377_s8 = int_to_ptr.vmem [resolvable:$true] %s376_s8 }
  0x38   :  { %v112_v5 = vld [vmem:[#allocation5 + $0x180] sm:$0xff]  ;;  %v113_v6 = vld [vmem:[#allocation5 + $0x188] sm:$0xff]  ;;  %v512_v7 = vpack.c.bf16 %v65_v4, %v64_v2  ;;  %v83_v13 = vld [vmem:[#allocation5 + $0x98] sm:$0xff]  ;;  %p678_p11 = scmp.lt.s32.totalorder %s377_s8, %s377_s8 }
  0x39   :  { %v542_v8 = vpack.c.bf16 %v113_v6, %v112_v5  ;;  %v96_v9 = vld [vmem:[#allocation5 + $0x100] sm:$0xff]  ;;  %v97_v10 = vld [vmem:[#allocation5 + $0x108] sm:$0xff]  ;;  %511 = vmatprep.subr.bf16.mxu0 %v510_v3  ;;  %v66_v14 = vld [vmem:[#allocation5 + $0x10] sm:$0xff]  ;;  %v514_v16 = vpack.c.bf16 %v83_v13, %v82_v11 }
  0x3a   :  { %v544_v12 = vpack.c.bf16 %v97_v10, %v96_v9  ;;  %v67_v15 = vld [vmem:[#allocation5 + $0x18] sm:$0xff]  ;;  %513 = vmatpush3.bf16.msra.mxu0 %v512_v7  ;;  %v114_v18 = vld [vmem:[#allocation5 + $0x190] sm:$0xff]  ;;  %v84_v23 = vld [vmem:[#allocation5 + $0xa0] sm:$0xff] }
  0x3b   :  { %543 = vmatprep.subr.bf16.mxu1 %v542_v8  ;;  %v516_v17 = vpack.c.bf16 %v67_v15, %v66_v14  ;;  %v115_v19 = vld [vmem:[#allocation5 + $0x198] sm:$0xff]  ;;  %v98_v20 = vld [vmem:[#allocation5 + $0x110] sm:$0xff]  ;;  %v85_v24 = vld [vmem:[#allocation5 + $0xa8] sm:$0xff]  ;;  %515 = vmatprep.subr.bf16.mxu0 %v514_v16 }
  0x3c   :  { %545 = vmatpush3.bf16.msra.mxu1 %v544_v12  ;;  %v546_v21 = vpack.c.bf16 %v115_v19, %v114_v18  ;;  %v99_v22 = vld [vmem:[#allocation5 + $0x118] sm:$0xff]  ;;  %v518_v26 = vpack.c.bf16 %v85_v24, %v84_v23  ;;  %v68_v27 = vld [vmem:[#allocation5 + $0x20] sm:$0xff]  ;;  %v69_v28 = vld [vmem:[#allocation5 + $0x28] sm:$0xff] }
  0x3d   :  { %v548_v25 = vpack.c.bf16 %v99_v22, %v98_v20  ;;  %v116_v29 = vld [vmem:[#allocation5 + $0x1a0] sm:$0xff]  ;;  %v117_v30 = vld [vmem:[#allocation5 + $0x1a8] sm:$0xff]  ;;  %v520_v33 = vpack.c.bf16 %v69_v28, %v68_v27  ;;  %v86_v35 = vld [vmem:[#allocation5 + $0xb0] sm:$0xff] }
  0x3e   :  { %547 = vmatprep.subr.bf16.mxu1 %v546_v21  ;;  %v100_v31 = vld [vmem:[#allocation5 + $0x120] sm:$0xff]  ;;  %v101_v32 = vld [vmem:[#allocation5 + $0x128] sm:$0xff]  ;;  %517 = vmatpush3.bf16.msra.mxu0 %v516_v17  ;;  %v550_v34 = vpack.c.bf16 %v117_v30, %v116_v29  ;;  %v87_v36 = vld [vmem:[#allocation5 + $0xb8] sm:$0xff] }
  0x3f   :  { %v70_v37 = vld [vmem:[#allocation5 + $0x30] sm:$0xff]  ;;  %519 = vmatprep.subr.bf16.mxu0 %v518_v26  ;;  %v552_v38 = vpack.c.bf16 %v101_v32, %v100_v31  ;;  %v522_v39 = vpack.c.bf16 %v87_v36, %v86_v35  ;;  %v71_v40 = vld [vmem:[#allocation5 + $0x38] sm:$0xff]  ;;  %v88_v46 = vld [vmem:[#allocation5 + $0xc0] sm:$0xff] }
  0x40   :  { %549 = vmatpush3.bf16.msra.mxu1 %v548_v25  ;;  %v118_v41 = vld [vmem:[#allocation5 + $0x1b0] sm:$0xff]  ;;  %v119_v42 = vld [vmem:[#allocation5 + $0x1b8] sm:$0xff]  ;;  %v89_v47 = vld [vmem:[#allocation5 + $0xc8] sm:$0xff]  ;;  %v524_v48 = vpack.c.bf16 %v71_v40, %v70_v37 }
  0x41   :  { %551 = vmatprep.subr.bf16.mxu1 %v550_v34  ;;  %v554_v43 = vpack.c.bf16 %v119_v42, %v118_v41  ;;  %v102_v44 = vld [vmem:[#allocation5 + $0x130] sm:$0xff]  ;;  %v103_v45 = vld [vmem:[#allocation5 + $0x138] sm:$0xff]  ;;  %v120_v49 = vld [vmem:[#allocation5 + $0x1c0] sm:$0xff]  ;;  %v526_v52 = vpack.c.bf16 %v89_v47, %v88_v46 }
  0x42   :  { %521 = vmatpush3.bf16.msra.mxu0 %v520_v33  ;;  %v121_v50 = vld [vmem:[#allocation5 + $0x1c8] sm:$0xff]  ;;  %v556_v51 = vpack.c.bf16 %v103_v45, %v102_v44  ;;  %v72_v53 = vld [vmem:[#allocation5 + $0x40] sm:$0xff]  ;;  %v90_v58 = vld [vmem:[#allocation5 + $0xd0] sm:$0xff] }
  0x43   :  { %523 = vmatprep.subr.bf16.mxu0 %v522_v39  ;;  %v73_v54 = vld [vmem:[#allocation5 + $0x48] sm:$0xff]  ;;  %v104_v55 = vld [vmem:[#allocation5 + $0x140] sm:$0xff]  ;;  %v558_v56 = vpack.c.bf16 %v121_v50, %v120_v49  ;;  %v91_v59 = vld [vmem:[#allocation5 + $0xd8] sm:$0xff]  ;;  %v706_v39 = vmov 0.0|0.0  }
  0x44   :  { %553 = vmatpush3.bf16.msra.mxu1 %v552_v38  ;;  %v105_v57 = vld [vmem:[#allocation5 + $0x148] sm:$0xff]  ;;  %v122_v60 = vld [vmem:[#allocation5 + $0x1d0] sm:$0xff]  ;;  %v123_v61 = vld [vmem:[#allocation5 + $0x1d8] sm:$0xff]  ;;  %v528_v62 = vpack.c.bf16 %v73_v54, %v72_v53  ;;  %v530_v0 = vpack.c.bf16 %v91_v59, %v90_v58 }
  0x45   :  { %555 = vmatprep.subr.bf16.mxu1 %v554_v43  ;;  %v560_v63 = vpack.c.bf16 %v105_v57, %v104_v55  ;;  %v74_v1 = vld [vmem:[#allocation5 + $0x50] sm:$0xff]  ;;  %v75_v2 = vld [vmem:[#allocation5 + $0x58] sm:$0xff]  ;;  %v562_v4 = vpack.c.bf16 %v123_v61, %v122_v60  ;;  %v92_v6 = vld [vmem:[#allocation5 + $0xe0] sm:$0xff]  ;;  %v708_v61 = vmov 0.0  }
  0x46   :  { %525 = vmatpush3.bf16.msra.mxu0 %v524_v48  ;;  %v106_v3 = vld [vmem:[#allocation5 + $0x150] sm:$0xff]  ;;  %v107_v5 = vld [vmem:[#allocation5 + $0x158] sm:$0xff]  ;;  %v93_v7 = vld [vmem:[#allocation5 + $0xe8] sm:$0xff]  ;;  %v532_v10 = vpack.c.bf16 %v75_v2, %v74_v1 }
  0x47   :  { %527 = vmatprep.subr.bf16.mxu0 %v526_v52  ;;  %v124_v8 = vld [vmem:[#allocation5 + $0x1e0] sm:$0xff]  ;;  %v125_v9 = vld [vmem:[#allocation5 + $0x1e8] sm:$0xff]  ;;  %v564_v13 = vpack.c.bf16 %v107_v5, %v106_v3  ;;  %v534_v14 = vpack.c.bf16 %v93_v7, %v92_v6  ;;  %v94_v19 = vld [vmem:[#allocation5 + $0xf0] sm:$0xff] }
  0x48   :  { %557 = vmatpush3.bf16.msra.mxu1 %v556_v51  ;;  %v76_v11 = vld [vmem:[#allocation5 + $0x60] sm:$0xff]  ;;  %v77_v12 = vld [vmem:[#allocation5 + $0x68] sm:$0xff]  ;;  %v566_v18 = vpack.c.bf16 %v125_v9, %v124_v8  ;;  %v95_v20 = vld [vmem:[#allocation5 + $0xf8] sm:$0xff] }
  0x49   :  { %559 = vmatprep.subr.bf16.mxu1 %v558_v56  ;;  %v108_v15 = vld [vmem:[#allocation5 + $0x160] sm:$0xff]  ;;  %v109_v16 = vld [vmem:[#allocation5 + $0x168] sm:$0xff]  ;;  %v63_v21 = vld [vmem:[#allocation2 + $0x18] sm:$0xff]  ;;  %v536_v24 = vpack.c.bf16 %v77_v12, %v76_v11  ;;  %v538_v26 = vpack.c.bf16 %v95_v20, %v94_v19 }
  0x4a   :  { %529 = vmatpush3.bf16.msra.mxu0 %v528_v62  ;;  %v61_v17 = vld [vmem:[#allocation2 + $0x8] sm:$0xff]  ;;  %v126_v22 = vld [vmem:[#allocation5 + $0x1f0] sm:$0xff]  ;;  %v127_v23 = vld [vmem:[#allocation5 + $0x1f8] sm:$0xff]  ;;  %269 = vmatprep.mubr.f32.mxu1 %v63_v21  ;;  %v568_v25 = vpack.c.bf16 %v109_v16, %v108_v15 }
  0x4b   :  { %531 = vmatprep.subr.bf16.mxu0 %v530_v0  ;;  %199 = vmatprep.mubr.f32.mxu0 %v61_v17  ;;  %v78_v27 = vld [vmem:[#allocation5 + $0x70] sm:$0xff]  ;;  %v79_v28 = vld [vmem:[#allocation5 + $0x78] sm:$0xff]  ;;  %v570_v29 = vpack.c.bf16 %v127_v23, %v126_v22  ;;  %v276_v34 = vld [vmem:[#allocation7] sm:$0xff] }
  0x4c   :  { %561 = vmatpush3.bf16.msra.mxu1 %v560_v63  ;;  %v110_v30 = vld [vmem:[#allocation5 + $0x170] sm:$0xff]  ;;  %v111_v31 = vld [vmem:[#allocation5 + $0x178] sm:$0xff]  ;;  %v540_v32 = vpack.c.bf16 %v79_v28, %v78_v27  ;;  %v277_v35 = vld [vmem:[#allocation7 + $0x8] sm:$0xff] }
  0x4d   :  { %563 = vmatprep.subr.bf16.mxu1 %v562_v4  ;;  %v572_v33 = vpack.c.bf16 %v111_v31, %v110_v30  ;;  %v60_v36 = vld [vmem:[#allocation2] sm:$0xff]  ;;  %v575_v37 = vpack.c.bf16 %v277_v35, %v276_v34  ;;  %v62_v38 = vld [vmem:[#allocation2 + $0x10] sm:$0xff]  ;;  %v279_v41 = vld [vmem:[#allocation7 + $0x18] sm:$0xff] }
  0x4e   :  { %533 = vmatpush3.bf16.msra.mxu0 %v532_v10  ;;  %v278_v40 = vld [vmem:[#allocation7 + $0x10] sm:$0xff]  ;;  %v280_v43 = vld [vmem:[#allocation7 + $0x20] sm:$0xff]  ;;  %v281_v44 = vld [vmem:[#allocation7 + $0x28] sm:$0xff] }
  0x4f   :  { %535 = vmatprep.subr.bf16.mxu0 %v534_v14  ;;  %v578_v42 = vpack.c.bf16 %v279_v41, %v278_v40  ;;  %v581_v45 = vpack.c.bf16 %v281_v44, %v280_v43  ;;  %v282_v46 = vld [vmem:[#allocation7 + $0x30] sm:$0xff]  ;;  %v283_v47 = vld [vmem:[#allocation7 + $0x38] sm:$0xff]  ;;  %v284_v49 = vld [vmem:[#allocation7 + $0x40] sm:$0xff] }
  0x50   :  { %565 = vmatpush3.bf16.msra.mxu1 %v564_v13  ;;  %v584_v48 = vpack.c.bf16 %v283_v47, %v282_v46  ;;  %v285_v50 = vld [vmem:[#allocation7 + $0x48] sm:$0xff]  ;;  %v286_v52 = vld [vmem:[#allocation7 + $0x50] sm:$0xff]  ;;  %v287_v53 = vld [vmem:[#allocation7 + $0x58] sm:$0xff] }
  0x51   :  { %567 = vmatprep.subr.bf16.mxu1 %v566_v18  ;;  %v587_v51 = vpack.c.bf16 %v285_v50, %v284_v49  ;;  %v590_v54 = vpack.c.bf16 %v287_v53, %v286_v52  ;;  %v288_v55 = vld [vmem:[#allocation7 + $0x60] sm:$0xff]  ;;  %v289_v56 = vld [vmem:[#allocation7 + $0x68] sm:$0xff]  ;;  %v290_v58 = vld [vmem:[#allocation7 + $0x70] sm:$0xff] }
  0x52   :  { %537 = vmatpush3.bf16.msra.mxu0 %v536_v24  ;;  %v593_v57 = vpack.c.bf16 %v289_v56, %v288_v55  ;;  %v291_v59 = vld [vmem:[#allocation7 + $0x78] sm:$0xff]  ;;  %v386_v63 = vld [vmem:[%s802_s2] ss:$0 sm:$0xff]  ;;  %s673_s2 = scalar_lea.vmem %s377_s8, 128 }
  0x53   :  { %539 = vmatprep.subr.bf16.mxu0 %v538_v26  ;;  %v596_v60 = vpack.c.bf16 %v291_v59, %v290_v58  ;;  %v387_v8 = vld [vmem:[%s804_s4] ss:$0 sm:$0xff]  ;;  %p674_p10 = scmp.ne.s32.totalorder %s377_s8, %s673_s2  ;;  %p679_p12 = scmp.lt.s32.totalorder %s673_s2, %s673_s2 }
  0x54   :  { %569 = vmatpush3.bf16.msra.mxu1 %v568_v25 }
  0x55   :  { %571 = vmatprep.subr.bf16.mxu1 %v570_v29  ;;  %p680_p13 = por %p679_p12, %p678_p11 }
  0x56   :  { %541 = vmatpush3.bf16.msra.mxu0 %v540_v32 }
  0x57   :  { %574 = vmatprep.subr.bf16.mxu0 %v706_v39  ;;  %p681_p0 = pnand %p680_p13, %p674_p10 }
  0x58   :  { %573 = vmatpush3.bf16.msra.mxu1 %v572_v33 }
  0x59   :  { %200 = vmatmul.mubr.f32.vlgmr.msra.gmra.mrb[0].mxu0 %v60_v36 }
  0x5a   :  { %576 = vmatpush3.bf16.msra.mxu0 %v575_v37  ;;  %507 = vmatprep.mubr.msk.f32.mxu0 %vm707_vm0, %v708_v61 }
  0x5b   :  { %270 = vmatmul.mubr.f32.vlgmr.msra.gmra.mrb[0].mxu1 %v62_v38  ;;  %577 = vmatprep.subr.bf16.mxu0 %v706_v39 }
  0x5e   :  { %579 = vmatpush3.bf16.msra.mxu0 %v578_v42 }
  0x5f   :  { %580 = vmatprep.subr.bf16.mxu0 %v706_v39 }
  0x62   :  { %582 = vmatpush3.bf16.msra.mxu0 %v581_v45 }
  0x63   :  { %583 = vmatprep.subr.bf16.mxu0 %v706_v39 }
  0x66   :  { %585 = vmatpush3.bf16.msra.mxu0 %v584_v48 }
  0x67   :  { %586 = vmatprep.subr.bf16.mxu0 %v706_v39 }
  0x6a   :  { %588 = vmatpush3.bf16.msra.mxu0 %v587_v51 }
  0x6b   :  { %589 = vmatprep.subr.bf16.mxu0 %v706_v39 }
  0x6e   :  { %591 = vmatpush3.bf16.msra.mxu0 %v590_v54 }
  0x6f   :  { %592 = vmatprep.subr.bf16.mxu0 %v706_v39 }
  0x72   :  { %594 = vmatpush3.bf16.msra.mxu0 %v593_v57 }
  0x73   :  { %595 = vmatprep.subr.bf16.mxu0 %v706_v39 }
  0x76   :  { %597 = vmatpush3.bf16.msra.mxu0 %v596_v60 }
 0x12c   :  { %v420_v62 = vpop.f32.mrb[0].mxu0 }
 0x12d   :  { %v421_v0 = vpop.f32.mrb[1].mxu0 }
 0x12e   :  { %v455_v1 = vpop.f32.mrb[0].mxu1  ;;  %v422_v2 = vadd.f32 %v421_v0, %v420_v62 }
 0x12f   :  { %v456_v3 = vpop.f32.mrb[1].mxu1 }
 0x130   :  { %v457_v4 = vadd.f32 %v456_v3, %v455_v1  ;;  %v202_v5 = vadd.f32 %v422_v2, %v386_v63 }
 0x132   :  { %v272_v6 = vadd.f32 %v457_v4, %v202_v5 }
 0x134   :  { %v275_v7 = vmax.f32 %v272_v6, 0.0 }
 0x136   :  { %508 = vmatmul.mubr.f32.vlgmr.msra.gmra.mrb[2].mxu0 %v275_v7 }
 0x209   :  { %v365_v9 = vpop.f32.mrb[2].mxu0 }
 0x20a   :  { %v366_v10 = vadd.f32 %v387_v8, %v365_v9  ;;  %v509_v11 = vpop.f32.mrb[3].mxu0 }
 0x20c   :  { %369 = vst [vmem:[#allocation8] sm:$0xff] %v366_v10 }
 0x20d   :  { %684 = shalt.err (!%p681_p0)
}
 0x20e   :  { %s685_s11 = scalar_lea.hbm %s805_s5, 128 }
 0x20f   :  { %p686_p1 = scmp.ne.s32.totalorder %s805_s5, %s685_s11  ;;  %p689_p2 = scmp.lt.u32.totalorder %s685_s11, %s805_s5 }
 0x211   :  { %p691_p3 = pnand %p689_p2, %p686_p1 }
 0x213   :  { %694 = shalt.err (!%p691_p3)
}
 0x214   :  { %379 = dma.vmem_to_hbm [thread:$0]  %s377_s8, 128, %s805_s5, [#allocation4]  }
 0x215   :  { %699 = dma.done.wait [#allocation4], 128  }
 0x216   :  { %700 = vsyncadd [#allocation4], 4294967168 }
 0x217   :  { %383 = vsyncpa [#allocation3], 1 }
 0x218   :  { %384 = vsyncpa [#allocation6], 1 }
 0x219   :  { %385 = vsyncpa [#allocation4], 1 }

</bundles_post_ra>
